<compile_context>
chip_gen: v7x
topology: tpu7x:2x2x1
jax: 0.10.0
libtpu: 0.0.40
codegen_flags: <defaults>
</compile_context>

<pallas_src>
import math

import jax
import jax.numpy as jnp
from jax.experimental import pallas as pl
from jax.experimental.pallas import tpu as pltpu

MIN_NORM = 1e-15
BALL_EPS = 4e-3          # PoincareBall eps for float32
ATANH_CLIP = 1e-7        # float32-safe version of torch's 1e-15 clamp

_MAX_PACKED_ROWS = 2048          # (rows, 128) f32 block -> 1 MiB
_ROW_BLOCK_BYTES = 1 << 20       # ~1 MiB row-path blocks
_VMEM_LIMIT_BYTES = 32 * 1024 * 1024


def _round_up(a: int, b: int) -> int:
    return (a + b - 1) // b * b


def _final_scale(s1, s2, c_in: float, c_out: float):
    """Single per-row scale applied to relu(x).

    s1 = sum(x^2) per row, s2 = sum(relu(x)^2) per row (any broadcastable
    shape). Since the logmap0 scale l = artanh(a_in)/a_in is positive,
    relu(l*x) = l*relu(x), ||xt|| = l*||relu(x)||, and expmap0+proj collapse
    to xt * min(tanh(a_out), 1-eps)/a_out, so the output is
        relu(x) * min(tanh(a_out), 1-eps) / (sqrt(c_out) * ||relu(x)||).
    All constants are Python floats (nothing captured as traced constants).
    """
    sqrt_ci = math.sqrt(c_in)
    sqrt_co = math.sqrt(c_out)
    inv_sqrt_ci = 1.0 / sqrt_ci
    inv_sqrt_co = 1.0 / sqrt_co
    min_sq = MIN_NORM * MIN_NORM

    rs1 = jax.lax.rsqrt(jnp.maximum(s1, min_sq))            # 1/||x||
    a_in = jnp.minimum(sqrt_ci * s1 * rs1, 1.0 - ATANH_CLIP)  # a_in >= 0
    artanh = 0.5 * (jnp.log1p(a_in) - jnp.log1p(-a_in))
    scale_log = artanh * rs1 * inv_sqrt_ci                   # logmap0 scale

    rs2 = jax.lax.rsqrt(jnp.maximum(s2, min_sq))             # 1/||relu(x)||
    a_out = sqrt_co * scale_log * (s2 * rs2)                 # sqrt(c_out)*||xt||
    t = jnp.tanh(a_out)
    return jnp.minimum(t, 1.0 - BALL_EPS) * rs2 * inv_sqrt_co


def make_packed_kernel(c_in: float, c_out: float):
    """Lane-packed kernel: block (tm, 128) holds 128/d_pad logical rows per
    packed row. Segmented per-row sums of squares run on the MXU against a
    resident block-diagonal 0/1 bf16 matrix, with a 2-pass hi/lo split for
    f32-level accuracy. Tail (out-of-bounds) rows may hold garbage; the math
    is row-local (block-diag seg) and those rows' writes are discarded."""

    def kernel(seg_ref, x_ref, o_ref):
        x = x_ref[...].astype(jnp.float32)                   # (tm, 128)
        seg = seg_ref[...]                                    # (128,128) bf16 0/1
        r = jnp.maximum(x, 0.0)

        def seg_sum(v):                                       # v >= 0, f32
            hi = v.astype(jnp.bfloat16)
            lo = (v - hi.astype(jnp.float32)).astype(jnp.bfloat16)
            return (jnp.dot(hi, seg, preferred_element_type=jnp.float32)
                    + jnp.dot(lo, seg, preferred_element_type=jnp.float32))

        s1 = seg_sum(x * x)                                   # broadcast per segment
        s2 = seg_sum(r * r)
        o_ref[...] = (r * _final_scale(s1, s2, c_in, c_out)).astype(o_ref.dtype)

    return kernel


def make_row_kernel(c_in: float, c_out: float):
    """Fallback kernel (D >= 128): block (tm, D), plain lane reduction."""

    def kernel(x_ref, o_ref):
        x = x_ref[...].astype(jnp.float32)
        r = jnp.maximum(x, 0.0)
        s1 = jnp.sum(x * x, axis=-1, keepdims=True)
        s2 = jnp.sum(r * r, axis=-1, keepdims=True)
        o_ref[...] = (r * _final_scale(s1, s2, c_in, c_out)).astype(o_ref.dtype)

    return kernel


def hyp_act(x, *, c_in: float = 1.0, c_out: float = 0.5):
    """HypAct forward (ReLU act). x: [N, D]. Any N; any D."""
    c_in = float(c_in)
    c_out = float(c_out)
    n, d = x.shape
    cp = pltpu.CompilerParams(dimension_semantics=("parallel",),
                              vmem_limit_bytes=_VMEM_LIMIT_BYTES)

    if d <= 128:
        # ---- lane-dense packed path: [N, D] -> [ceil(N/P), 128] ----
        d_pad = 1
        while d_pad < d:                   # next power of two >= d (divides 128)
            d_pad *= 2
        p = 128 // d_pad
        npk = pl.cdiv(n, p)
        row_pad = npk * p - n
        feat_pad = d_pad - d

        x_in = x
        if row_pad or feat_pad:
            # single wrapper copy, only when shapes actually require it
            x_in = jnp.pad(x, ((0, row_pad), (0, feat_pad)))
        xp = x_in.reshape(npk, 128)        # free (contiguous) reshape

        # >= 4 grid steps when possible, <= 1 MiB per block, multiple of 8 rows
        tm = max(8, min(_MAX_PACKED_ROWS, _round_up(pl.cdiv(npk, 4), 8)))
        grid = (pl.cdiv(npk, tm),)         # ragged tail handled by Pallas

        lane = jnp.arange(128, dtype=jnp.int32)
        seg = (lane[:, None] // d_pad == lane[None, :] // d_pad)
        seg = seg.astype(jnp.bfloat16)     # exact 0/1, resident across the grid

        out = pl.pallas_call(
            make_packed_kernel(c_in, c_out),
            out_shape=jax.ShapeDtypeStruct((npk, 128), x.dtype),
            grid=grid,
            in_specs=[pl.BlockSpec((128, 128), lambda i: (0, 0)),   # seg: DMA'd once
                      pl.BlockSpec((tm, 128), lambda i: (i, 0))],
            out_specs=pl.BlockSpec((tm, 128), lambda i: (i, 0)),
            compiler_params=cp,
        )(seg, xp)

        out = out.reshape(npk * p, d_pad)  # free reshape
        if row_pad or feat_pad:
            out = out[:n, :d]              # single slice on the return path
        return out

    # ---- plain row-tiled path (D >= 128) ----
    rows_cap = max(8, (_ROW_BLOCK_BYTES // (4 * d)) // 8 * 8)
    tm = max(8, min(rows_cap, _round_up(pl.cdiv(n, 4), 8)))
    grid = (pl.cdiv(n, tm),)               # ragged tail handled by Pallas

    out = pl.pallas_call(
        make_row_kernel(c_in, c_out),
        out_shape=jax.ShapeDtypeStruct((n, d), x.dtype),
        grid=grid,
        in_specs=[pl.BlockSpec((tm, d), lambda i: (i, 0))],
        out_specs=pl.BlockSpec((tm, d), lambda i: (i, 0)),
        compiler_params=cp,
    )(x)
    return out


def hyp_act_ref(x, c_in, c_out):
    """Pure-JAX reference mirroring the PyTorch / geoopt math."""
    x = x.astype(jnp.float32)
    sqrt_ci = math.sqrt(c_in)
    sqrt_co = math.sqrt(c_out)
    xn = jnp.maximum(jnp.linalg.norm(x, axis=-1, keepdims=True), MIN_NORM)
    z = jnp.clip(sqrt_ci * xn, -1.0 + ATANH_CLIP, 1.0 - ATANH_CLIP)
    artanh = 0.5 * (jnp.log1p(z) - jnp.log1p(-z))
    xt = artanh / (sqrt_ci * xn) * x
    xt = jax.nn.relu(xt)
    un = jnp.maximum(jnp.linalg.norm(xt, axis=-1, keepdims=True), MIN_NORM)
    gamma = jnp.tanh(sqrt_co * un) * xt / (sqrt_co * un)
    gn = jnp.maximum(jnp.linalg.norm(gamma, axis=-1, keepdims=True), MIN_NORM)
    maxnorm = (1.0 - BALL_EPS) / sqrt_co
    return jnp.where(gn > maxnorm, gamma / gn * maxnorm, gamma)


if __name__ == "__main__":
    key = jax.random.PRNGKey(0)
    k1, k2, k3, k4 = jax.random.split(key, 4)
    C_IN, C_OUT = 1.0, 0.5

    def check(xk):
        out = jax.block_until_ready(hyp_act(xk, c_in=C_IN, c_out=C_OUT))
        ref = hyp_act_ref(xk, C_IN, C_OUT)
        assert out.shape == xk.shape and out.dtype == xk.dtype
        err = float(jnp.max(jnp.abs(out - ref)))
        assert jnp.allclose(out, ref, atol=1e-5, rtol=1e-5), err

    # Packed path, D divides 128, N % P == 0 -> zero wrapper copies.
    check(0.1 * jax.random.normal(k1, (64, 32), dtype=jnp.float32))

    # Packed path, ragged N (exercises small row pad + ragged grid tail).
    check(0.1 * jax.random.normal(k2, (37, 32), dtype=jnp.float32))

    # Packed path via feature widening (D=48 -> 64, P=2), ragged grid tail.
    check(0.1 * jax.random.normal(k3, (50, 48), dtype=jnp.float32))

    # Row-tiled fallback (D > 128), ragged N.
    check(0.1 * jax.random.normal(k4, (50, 160), dtype=jnp.float32))

    print("KERNEL_OK")
</pallas_src>

<mosaic_0001>
module attributes {stable_mosaic.version = 11 : i64} {
  func.func @kernel(%arg0: i32, %arg1: memref<128x128xbf16, #tpu.memory_space<vmem>>, %arg2: memref<8x128xf32, #tpu.memory_space<vmem>>, %arg3: memref<8x128xf32, #tpu.memory_space<vmem>>) attributes {dimension_semantics = [#tpu.dimension_semantics<parallel>], iteration_bounds = array<i64: 2>, scalar_prefetch = 0 : i64, scratch_operands = 0 : i64, tpu.core_type = #tpu.core_type<tc>, window_params = [{pipeline_mode = #tpu.pipeline_mode<synchronous>, transform_indices = @transform_0, window_bounds = array<i64: 128, 128>}, {transform_indices = @transform_1, window_bounds = array<i64: 8, 128>}, {transform_indices = @transform_2, window_bounds = array<i64: 8, 128>}]} {
    %c0 = arith.constant 0 : index
    %c0_0 = arith.constant 0 : index
    %0 = vector.load %arg2[%c0, %c0_0] : memref<8x128xf32, #tpu.memory_space<vmem>>, vector<8x128xf32>
    %c0_1 = arith.constant 0 : index
    %c0_2 = arith.constant 0 : index
    %1 = vector.load %arg1[%c0_1, %c0_2] : memref<128x128xbf16, #tpu.memory_space<vmem>>, vector<128x128xbf16>
    %cst = arith.constant 0.000000e+00 : f32
    %2 = vector.broadcast %cst : f32 to vector<8x128xf32>
    %3 = arith.maximumf %0, %2 : vector<8x128xf32>
    %4 = arith.mulf %0, %0 : vector<8x128xf32>
    %5 = arith.truncf %4 : vector<8x128xf32> to vector<8x128xbf16>
    %6 = arith.extf %5 : vector<8x128xbf16> to vector<8x128xf32>
    %7 = arith.subf %4, %6 : vector<8x128xf32>
    %8 = arith.truncf %7 : vector<8x128xf32> to vector<8x128xbf16>
    %cst_3 = arith.constant dense<0.000000e+00> : vector<8x128xf32>
    %9 = tpu.matmul %5, %1, %cst_3 {dimension_numbers = #tpu.dot_dimension_numbers<[1], [0], [0], [1], [0, 0, 1, 1], [], []>} : vector<8x128xbf16>, vector<128x128xbf16>, vector<8x128xf32> -> vector<8x128xf32>
    %cst_4 = arith.constant dense<0.000000e+00> : vector<8x128xf32>
    %10 = tpu.matmul %8, %1, %cst_4 {dimension_numbers = #tpu.dot_dimension_numbers<[1], [0], [0], [1], [0, 0, 1, 1], [], []>} : vector<8x128xbf16>, vector<128x128xbf16>, vector<8x128xf32> -> vector<8x128xf32>
    %11 = arith.addf %9, %10 : vector<8x128xf32>
    %12 = arith.mulf %3, %3 : vector<8x128xf32>
    %13 = arith.truncf %12 : vector<8x128xf32> to vector<8x128xbf16>
    %14 = arith.extf %13 : vector<8x128xbf16> to vector<8x128xf32>
    %15 = arith.subf %12, %14 : vector<8x128xf32>
    %16 = arith.truncf %15 : vector<8x128xf32> to vector<8x128xbf16>
    %cst_5 = arith.constant dense<0.000000e+00> : vector<8x128xf32>
    %17 = tpu.matmul %13, %1, %cst_5 {dimension_numbers = #tpu.dot_dimension_numbers<[1], [0], [0], [1], [0, 0, 1, 1], [], []>} : vector<8x128xbf16>, vector<128x128xbf16>, vector<8x128xf32> -> vector<8x128xf32>
    %cst_6 = arith.constant dense<0.000000e+00> : vector<8x128xf32>
    %18 = tpu.matmul %16, %1, %cst_6 {dimension_numbers = #tpu.dot_dimension_numbers<[1], [0], [0], [1], [0, 0, 1, 1], [], []>} : vector<8x128xbf16>, vector<128x128xbf16>, vector<8x128xf32> -> vector<8x128xf32>
    %19 = arith.addf %17, %18 : vector<8x128xf32>
    %cst_7 = arith.constant 1.000000e-30 : f32
    %20 = vector.broadcast %cst_7 : f32 to vector<8x128xf32>
    %21 = arith.maximumf %11, %20 : vector<8x128xf32>
    %22 = math.rsqrt %21 : vector<8x128xf32>
    %cst_8 = arith.constant 1.000000e+00 : f32
    %23 = vector.broadcast %cst_8 : f32 to vector<8x128xf32>
    %24 = arith.mulf %23, %11 : vector<8x128xf32>
    %25 = arith.mulf %24, %22 : vector<8x128xf32>
    %cst_9 = arith.constant 0.99999988 : f32
    %26 = vector.broadcast %cst_9 : f32 to vector<8x128xf32>
    %27 = arith.minimumf %25, %26 : vector<8x128xf32>
    %28 = math.log1p %27 : vector<8x128xf32>
    %cst_10 = arith.constant 0.000000e+00 : f32
    %29 = vector.broadcast %cst_10 : f32 to vector<8x128xf32>
    %30 = arith.subf %29, %27 : vector<8x128xf32>
    %31 = math.log1p %30 : vector<8x128xf32>
    %32 = arith.subf %28, %31 : vector<8x128xf32>
    %cst_11 = arith.constant 5.000000e-01 : f32
    %33 = vector.broadcast %cst_11 : f32 to vector<8x128xf32>
    %34 = arith.mulf %33, %32 : vector<8x128xf32>
    %35 = arith.mulf %34, %22 : vector<8x128xf32>
    %cst_12 = arith.constant 1.000000e+00 : f32
    %36 = vector.broadcast %cst_12 : f32 to vector<8x128xf32>
    %37 = arith.mulf %35, %36 : vector<8x128xf32>
    %cst_13 = arith.constant 1.000000e-30 : f32
    %38 = vector.broadcast %cst_13 : f32 to vector<8x128xf32>
    %39 = arith.maximumf %19, %38 : vector<8x128xf32>
    %40 = math.rsqrt %39 : vector<8x128xf32>
    %cst_14 = arith.constant 0.707106769 : f32
    %41 = vector.broadcast %cst_14 : f32 to vector<8x128xf32>
    %42 = arith.mulf %41, %37 : vector<8x128xf32>
    %43 = arith.mulf %19, %40 : vector<8x128xf32>
    %44 = arith.mulf %42, %43 : vector<8x128xf32>
    %45 = math.tanh %44 : vector<8x128xf32>
    %cst_15 = arith.constant 0.995999991 : f32
    %46 = vector.broadcast %cst_15 : f32 to vector<8x128xf32>
    %47 = arith.minimumf %45, %46 : vector<8x128xf32>
    %48 = arith.mulf %47, %40 : vector<8x128xf32>
    %cst_16 = arith.constant 1.41421354 : f32
    %49 = vector.broadcast %cst_16 : f32 to vector<8x128xf32>
    %50 = arith.mulf %48, %49 : vector<8x128xf32>
    %51 = arith.mulf %3, %50 : vector<8x128xf32>
    %c0_17 = arith.constant 0 : index
    %c0_18 = arith.constant 0 : index
    %52 = vector.load %arg3[%c0_17, %c0_18] : memref<8x128xf32, #tpu.memory_space<vmem>>, vector<8x128xf32>
    tpu.vector_store %arg3[%c0_17, %c0_18], %51 {strides = array<i32>} : memref<8x128xf32, #tpu.memory_space<vmem>>, vector<8x128xf32>,
    return
  }
  func.func @transform_0(%arg0: i32) -> (i32, i32) {
    %c0_i32 = arith.constant 0 : i32
    %c0_i32_0 = arith.constant 0 : i32
    %c0_i32_1 = arith.constant 0 : i32
    return %c0_i32, %c0_i32_0 : i32, i32
  }
  func.func @transform_1(%arg0: i32) -> (i32, i32) {
    %c0_i32 = arith.constant 0 : i32
    %c0_i32_0 = arith.constant 0 : i32
    return %arg0, %c0_i32 : i32, i32
  }
  func.func @transform_2(%arg0: i32) -> (i32, i32) {
    %c0_i32 = arith.constant 0 : i32
    %c0_i32_0 = arith.constant 0 : i32
    return %arg0, %c0_i32 : i32, i32
  }
}

</mosaic_0001>

<bundles_post_ra>
// kernel: tpu_custom_call.1
= control target key start
LH: loop header
LB: loop body
LE: loop exit
PB: predicated region body
PF: predicated region fallthrough
CT: control target
= control target key end

     0   :  { %7 = vsyncpa [#allocation3], 0  ;;  %s1166_s0 = inlined_call_operand.hbm [shape: bf16[128,128], index: 0, kind: input, shape index: {}]   ;;  %s1167_s1 = inlined_call_operand.hbm [shape: f32[16,128], index: 1, kind: input, shape index: {}]   ;;  %s1168_s2 = inlined_call_operand.hbm [shape: f32[16,128], index: 2, kind: output, shape index: {}]  }
   0x1   :  { %8 = vsyncpa [#allocation6], 0 }
   0x2   :  { %10 = vsyncpa [#allocation6 + $0x1], 0 }
   0x3   :  { %11 = vsyncpa [#allocation4], 0 }
   0x4   :  { %13 = vsyncpa [#allocation4 + $0x1], 0  ;;  %s921_s9 = smov 0   ;;  %s923_s10 = smov 0  }
   0x5   :  { %s925_s11 = smov 0   ;;  %s927_s12 = smov 0  }
   0x6 LB: > { %s942_s13 = sadd.s32 4294967295, %s897_s12   ;;  %s544_s14 = sadd.s32 4294967294, %s897_s12   ;;  %s897_s12 = sphi %s927_s12, %s1188_s12   ;;  %s893_s11 = sphi %s925_s11, %s1187_s11   ;;  %s889_s10 = sphi %s923_s10, %s1186_s10   ;;  %s885_s9 = sphi %s921_s9, %s1185_s9  }
   0x7   : > { %p60_p0 = scmp.ne.s32.totalorder %s889_s10, %s885_s9  ;;  %p1169_p1 = scmp.eq.s32.totalorder %s942_s13, 0 }
   0x8   : > { %p90_p3 = scmp.eq.s32.totalorder %s544_s14, 1  ;;  %p545_p5 = scmp.ge.s32.totalorder %s897_s12, 1 }
   0x9   : > { %p951_p4 = por %p1169_p1, %p60_p0  ;;  %p97_p7 = scmp.lt.s32.totalorder %s897_s12, 3 }
   0xa   : > { %p956_p6 = por %p90_p3, %p60_p0  ;;  %s899_s18 = smov [#allocation2]  }
   0xb   : > { %s1172_s15 = scalar_select %p951_p4, 1, 0 }
   0xc   : > { %s1173_s16 = scalar_select %p956_p6, 1, 0 }
   0xd   : > { %p961_p8 = pnand %p545_p5, %p97_p7  ;;  %s109_s19 = sshll.u32 %s899_s18, 4  ;;  %s965_s19 = int_to_ptr.vmem [resolvable:$true] %s109_s19 }
   0xe   : > { %s977_s21 = sadd.s32 1, %s897_s12   ;;  %s47_s22 = sadd.s32 1, %s893_s11 }
   0xf   : > { %s1174_s17 = scalar_select %p961_p8, 1, 0 }
  0x10   : > { %p698_p9 = pneg %p961_p8  ;;  %s44_s23 = ssub.s32 %s897_s12, %s977_s21 }
  0x11   : > { %s769_s26 = scalar_lea.hbm %s1166_s0, 1024 }
  0x12   : > { %p972_p11 = pnand %p698_p9, %p1169_p1  ;;  %p770_p12 = scmp.ne.s32.totalorder %s1166_s0, %s769_s26 }
  0x13   : > { %p776_p5 = scmp.lt.u32.totalorder %s769_s26, %s1166_s0 }
  0x14   : > { %p771_p13 = pneg %p972_p11 }
  0x16   : > { %p772_p0 = pnand %p771_p13, %p770_p12 }
  0x18   : > { %p773_p3 = pneg %p772_p0 }
  0x1a   : > { %p778_p7 = pnand %p776_p5, %p773_p3 }
  0x1c   : > { %781 = shalt.err (!%p778_p7)
}
  0x1d   : > { %s782_s3 = scalar_lea.vmem %s965_s19, 1024  ;;  %p790_p2 = scmp.lt.s32.totalorder %s965_s19, %s965_s19 }
  0x1e   : > { %p783_p9 = scmp.ne.s32.totalorder %s965_s19, %s782_s3  ;;  %p791_p6 = scmp.lt.s32.totalorder %s782_s3, %s782_s3 }
  0x20   : > { %p785_p10 = pnand %p783_p9, %p771_p13  ;;  %p792_p4 = por %p791_p6, %p790_p2 }
  0x22   : > { %p786_p1 = pneg %p785_p10 }
  0x24   : > { %p793_p8 = pnand %p792_p4, %p786_p1 }
  0x26   : > { %796 = shalt.err (!%p793_p8)
}
  0x27   : > { %s900_s4 = smov 64   ;;  %s901_s5 = smov 4  }
  0x28   : > { %701 = dma.hbm_to_vmem [thread:$0]  (!%p972_p11), %s1166_s0, 1024, %s965_s19, [#allocation3], %s900_s4, %s900_s4, %s901_s5  }
  0x29   : > { %p45_p2 = scmp.eq.s32.totalorder %s44_s23, 0  ;;  %p54_p1 = scmp.ne.s32.totalorder %s893_s11, %s889_s10 }
  0x2a   : > { %p55_p4 = scmp.eq.s32.totalorder %s897_s12, 0  ;;  %p711_p6 = scmp.lt.s32.totalorder %s897_s12, 2 }
  0x2b   : > { %s1008_s8 = scalar_select %p45_p2, %s893_s11, %s47_s22  }
  0x2c   : > { %p56_p8 = por %p55_p4, %p54_p1  ;;  %p1176_p10 = scmp.eq.s32.totalorder %s942_s13, 1 }
  0x2d   : > { %s123_s18 = sand.u32 1, %s893_s11   ;;  %s549_s24 = sshll.u32 %s897_s12, 7 }
  0x2e   : > { %p1012_p12 = por %p1176_p10, %p54_p1  ;;  %s548_s25 = sshll.u32 %s123_s18, 3 }
  0x2f   : > { %s1021_s27 = scalar_lea.hbm %s1167_s1, %s549_s24  ;;  %s127_s19 = scalar_lea.vmem [#allocation5], %s548_s25 }
  0x30   : > { %s134_s22 = sshll.u32 %s127_s19, 4  ;;  %p1023_p11 = pnand %p711_p6, %p56_p8  ;;  %s1027_s22 = int_to_ptr.vmem [resolvable:$true] %s134_s22 }
  0x31   : > { %s124_s28 = scalar_lea.sflag [#allocation6], %s123_s18  ;;  %s797_s29 = scalar_lea.hbm %s1021_s27, 128 }
  0x32   : > { %p798_p13 = scmp.ne.s32.totalorder %s1021_s27, %s797_s29  ;;  %p799_p0 = pneg %p1023_p11 }
  0x33   : > { %s802_s4 = scalar_lea.hbm %s1167_s1, 256  ;;  %p803_p7 = scmp.lt.u32.totalorder %s1021_s27, %s1167_s1 }
  0x34   : > { %p800_p3 = pnand %p799_p0, %p798_p13  ;;  %p804_p9 = scmp.lt.u32.totalorder %s802_s4, %s797_s29 }
  0x35   : > { %p806_p1 = scmp.lt.u32.totalorder %s797_s29, %s1021_s27 }
  0x36   : > { %p801_p5 = pneg %p800_p3  ;;  %p805_p2 = por %p804_p9, %p803_p7 }
  0x38   : > { %p807_p4 = por %p806_p1, %p805_p2 }
  0x3a   : > { %p808_p6 = pnand %p807_p4, %p801_p5 }
  0x3c   : > { %811 = shalt.err (!%p808_p6)
}
  0x3d   : > { %s812_s7 = scalar_lea.vmem %s1027_s22, 128  ;;  %s902_s18 = smov [#allocation5]  }
  0x3e   : > { %p813_p8 = scmp.ne.s32.totalorder %s1027_s22, %s812_s7  ;;  %s817_s24 = sshll.u32 %s902_s18, 4  ;;  %s818_s24 = int_to_ptr.vmem [resolvable:$false] %s817_s24 }
  0x3f   : > { %s819_s25 = scalar_lea.vmem %s818_s24, 256  ;;  %p820_p3 = scmp.lt.s32.totalorder %s1027_s22, %s818_s24 }
  0x40   : > { %p815_p10 = pnand %p813_p8, %p799_p0  ;;  %p821_p7 = scmp.lt.s32.totalorder %s819_s25, %s812_s7 }
  0x42   : > { %p816_p13 = pneg %p815_p10  ;;  %p822_p9 = por %p821_p7, %p820_p3 }
  0x44   : > { %p823_p2 = pnand %p822_p9, %p816_p13 }
  0x46   : > { %826 = shalt.err (!%p823_p2)
}
  0x47   : > { %705 = dma.hbm_to_vmem [thread:$0]  (!%p1023_p11), %s1021_s27, 128, %s1027_s22, %s124_s28  }
  0x48   : > { %p1179_p5 = scmp.ne.s32.totalorder %s1174_s17, 0 }
  0x49   : > { %p1180_p0 = scmp.eq.s32.totalorder (!%p1179_p5), %s942_s13, 0 }
  0x4a   : > { %143 = sbr.rel (%p1179_p5) target bundleno = 442 (0x1ba), region = 28 }
  0x51   : > { %872 = dma.done.wait (%p1180_p0), [#allocation3], 1024   ;;  %p1181_p1 = pmov %p1180_p0 }
  0x52   : > { %s1061_s20 = sand.u32 1, %s889_s10   ;;  %p1182_p11 = scmp.ne.s32.totalorder %s1172_s15, 0 }
  0x53   : > { %874 = vsyncadd (%p1181_p1), [#allocation3], 4294966272  ;;  %s552_s26 = sshll.u32 %s1061_s20, 3  ;;  %s150_s19 = scalar_lea.sflag [#allocation6], %s1061_s20 }
  0x54   : > { %s153_s27 = scalar_lea.vmem [#allocation5], %s552_s26 }
  0x55   : > { %876 = dma.done.wait (%p1182_p11), %s150_s19, 128  }
  0x56   : > { %878 = vsyncadd (%p1182_p11), %s150_s19, 4294967168  ;;  %v903_v0 = vmov 0.0   ;;  %vm904_vm0 = vmmov 0   ;;  %v751_v1 = vld [vmem:[#allocation2] sm:$0xff]   ;;  %v752_v2 = vld [vmem:[#allocation2 + $0x8] sm:$0xff]   ;;  %s563_s15 = sshll.u32 %s942_s13, 7 }
  0x57   : > { %602 = vmatprep.subr.bf16.mxu0 %v903_v0  ;;  %642 = vmatprep.subr.bf16.mxu1 %v903_v0  ;;  %v753_v3 = vld [vmem:[#allocation2 + $0x10] sm:$0xff]   ;;  %v175_v4 = vld [vmem:[%s153_s27] sm:$0xff]  ;;  %v754_v6 = vld [vmem:[#allocation2 + $0x18] sm:$0xff]   ;;  %s173_s17 = scalar_lea.vmem [#allocation7], %s552_s26  ;;  %s1122_s29 = scalar_lea.hbm %s1168_s2, %s563_s15 }
  0x58   : > { %618 = vmatprep.mubr.msk.bf16.mxu0 %vm904_vm0, %v903_v0  ;;  %658 = vmatprep.mubr.msk.bf16.mxu1 %vm904_vm0, %v903_v0  ;;  %v1081_v5 = vmax.f32 %v175_v4, 0.0  ;;  %v193_v7 = vmul.f32 %v175_v4, %v175_v4  ;;  %v755_v9 = vld [vmem:[#allocation2 + $0x20] sm:$0xff]   ;;  %v756_v12 = vld [vmem:[#allocation2 + $0x28] sm:$0xff]   ;;  %v757_v15 = vld [vmem:[#allocation2 + $0x30] sm:$0xff]   ;;  %s462_s22 = sshll.u32 %s173_s17, 4  ;;  %s449_s30 = scalar_lea.sflag [#allocation4], %s1061_s20  ;;  %s1124_s22 = int_to_ptr.vmem [resolvable:$true] %s462_s22 }
  0x59   : > { %603 = vmatpush3.bf16.msra.mxu0 %v751_v1  ;;  %643 = vmatpush3.bf16.msra.mxu1 %v751_v1  ;;  %v758_v18 = vld [vmem:[#allocation2 + $0x38] sm:$0xff]   ;;  %s827_s3 = scalar_lea.vmem %s1124_s22, 128  ;;  %s905_s13 = smov [#allocation7]  }
  0x5a   : > { %604 = vmatprep.subr.bf16.mxu0 %v903_v0  ;;  %644 = vmatprep.subr.bf16.mxu1 %v903_v0  ;;  %v326_v8 = vmul.f32 %v1081_v5, %v1081_v5  ;;  %v194_v10 = vpack.c.bf16 %v193_v7, %v193_v7  ;;  %p828_p4 = scmp.ne.s32.totalorder %s1124_s22, %s827_s3  ;;  %s831_s4 = sshll.u32 %s905_s13, 4  ;;  %s832_s4 = int_to_ptr.vmem [resolvable:$false] %s831_s4 }
  0x5b   : > { %s833_s5 = scalar_lea.vmem %s832_s4, 256  ;;  %p834_p10 = scmp.lt.s32.totalorder %s1124_s22, %s832_s4 }
  0x5c   : > { %v327_v11 = vpack.c.bf16 %v326_v8, %v326_v8  ;;  %v195_v13 = vunpack.c.l.bf16 %v194_v10  ;;  %p829_p6 = pnand %p828_p4, %p1012_p12  ;;  %p835_p13 = scmp.lt.s32.totalorder %s833_s5, %s827_s3 }
  0x5d   : > { %605 = vmatpush3.bf16.msra.mxu0 %v752_v2  ;;  %645 = vmatpush3.bf16.msra.mxu1 %v752_v2 }
  0x5e   : > { %606 = vmatprep.subr.bf16.mxu0 %v903_v0  ;;  %646 = vmatprep.subr.bf16.mxu1 %v903_v0  ;;  %v328_v14 = vunpack.c.l.bf16 %v327_v11  ;;  %v196_v16 = vsub.f32 %v193_v7, %v195_v13  ;;  %p830_p8 = pneg %p829_p6  ;;  %p836_p3 = por %p835_p13, %p834_p10 }
  0x60   : > { %v329_v17 = vsub.f32 %v326_v8, %v328_v14  ;;  %v197_v19 = vpack.c.bf16 %v196_v16, %v196_v16  ;;  %p837_p7 = pnand %p836_p3, %p830_p8 }
  0x61   : > { %607 = vmatpush3.bf16.msra.mxu0 %v753_v3  ;;  %647 = vmatpush3.bf16.msra.mxu1 %v753_v3 }
  0x62   : > { %608 = vmatprep.subr.bf16.mxu0 %v903_v0  ;;  %648 = vmatprep.subr.bf16.mxu1 %v903_v0  ;;  %v330_v20 = vpack.c.bf16 %v329_v17, %v329_v17 }
  0x65   : > { %609 = vmatpush3.bf16.msra.mxu0 %v754_v6  ;;  %649 = vmatpush3.bf16.msra.mxu1 %v754_v6 }
  0x66   : > { %610 = vmatprep.subr.bf16.mxu0 %v903_v0  ;;  %650 = vmatprep.subr.bf16.mxu1 %v903_v0 }
  0x69   : > { %611 = vmatpush3.bf16.msra.mxu0 %v755_v9  ;;  %651 = vmatpush3.bf16.msra.mxu1 %v755_v9 }
  0x6a   : > { %612 = vmatprep.subr.bf16.mxu0 %v903_v0  ;;  %652 = vmatprep.subr.bf16.mxu1 %v903_v0 }
  0x6d   : > { %613 = vmatpush3.bf16.msra.mxu0 %v756_v12  ;;  %653 = vmatpush3.bf16.msra.mxu1 %v756_v12 }
  0x6e   : > { %614 = vmatprep.subr.bf16.mxu0 %v903_v0  ;;  %654 = vmatprep.subr.bf16.mxu1 %v903_v0 }
  0x71   : > { %615 = vmatpush3.bf16.msra.mxu0 %v757_v15  ;;  %655 = vmatpush3.bf16.msra.mxu1 %v757_v15 }
  0x72   : > { %616 = vmatprep.subr.bf16.mxu0 %v903_v0  ;;  %656 = vmatprep.subr.bf16.mxu1 %v903_v0 }
  0x75   : > { %617 = vmatpush3.bf16.msra.mxu0 %v758_v18  ;;  %657 = vmatpush3.bf16.msra.mxu1 %v758_v18 }
  0x76   : > { %622 = vmatprep.subr.bf16.mxu0 %v903_v0  ;;  %662 = vmatprep.subr.bf16.mxu1 %v903_v0 }
  0x78   : > { %619 = vmatmul.mubr.bf16.vlgmr.msra.gmra.mrb[0].mxu0 %v197_v19  ;;  %659 = vmatmul.mubr.bf16.vlgmr.msra.gmra.mrb[0].mxu1 %v330_v20 }
  0x79   : > { %623 = vmatpush3.bf16.msra.mxu0 %v751_v1  ;;  %663 = vmatpush3.bf16.msra.mxu1 %v751_v1 }
  0x7a   : > { %624 = vmatprep.subr.bf16.mxu0 %v903_v0  ;;  %664 = vmatprep.subr.bf16.mxu1 %v903_v0 }
  0x7b   : > { %638 = vmatprep.mubr.msk.bf16.mxu0 %vm904_vm0, %v903_v0  ;;  %678 = vmatprep.mubr.msk.bf16.mxu1 %vm904_vm0, %v903_v0 }
  0x7d   : > { %625 = vmatpush3.bf16.msra.mxu0 %v752_v2  ;;  %665 = vmatpush3.bf16.msra.mxu1 %v752_v2 }
  0x7e   : > { %626 = vmatprep.subr.bf16.mxu0 %v903_v0  ;;  %666 = vmatprep.subr.bf16.mxu1 %v903_v0 }
  0x81   : > { %627 = vmatpush3.bf16.msra.mxu0 %v753_v3  ;;  %667 = vmatpush3.bf16.msra.mxu1 %v753_v3 }
  0x82   : > { %628 = vmatprep.subr.bf16.mxu0 %v903_v0  ;;  %668 = vmatprep.subr.bf16.mxu1 %v903_v0 }
  0x85   : > { %629 = vmatpush3.bf16.msra.mxu0 %v754_v6  ;;  %669 = vmatpush3.bf16.msra.mxu1 %v754_v6 }
  0x86   : > { %630 = vmatprep.subr.bf16.mxu0 %v903_v0  ;;  %670 = vmatprep.subr.bf16.mxu1 %v903_v0 }
  0x89   : > { %631 = vmatpush3.bf16.msra.mxu0 %v755_v9  ;;  %671 = vmatpush3.bf16.msra.mxu1 %v755_v9 }
  0x8a   : > { %632 = vmatprep.subr.bf16.mxu0 %v903_v0  ;;  %672 = vmatprep.subr.bf16.mxu1 %v903_v0 }
  0x8d   : > { %633 = vmatpush3.bf16.msra.mxu0 %v756_v12  ;;  %673 = vmatpush3.bf16.msra.mxu1 %v756_v12 }
  0x8e   : > { %634 = vmatprep.subr.bf16.mxu0 %v903_v0  ;;  %674 = vmatprep.subr.bf16.mxu1 %v903_v0 }
  0x91   : > { %635 = vmatpush3.bf16.msra.mxu0 %v757_v15  ;;  %675 = vmatpush3.bf16.msra.mxu1 %v757_v15 }
  0x92   : > { %636 = vmatprep.subr.bf16.mxu0 %v903_v0  ;;  %676 = vmatprep.subr.bf16.mxu1 %v903_v0 }
  0x95   : > { %637 = vmatpush3.bf16.msra.mxu0 %v758_v18  ;;  %677 = vmatpush3.bf16.msra.mxu1 %v758_v18 }
  0x98   : > { %639 = vmatmul.mubr.bf16.vlgmr.msra.gmra.mrb[0].mxu0 %v194_v10  ;;  %679 = vmatmul.mubr.bf16.vlgmr.msra.gmra.mrb[0].mxu1 %v327_v11 }
 0x16b   : > { %v320_v21 = vpop.f32.mrb[0].mxu0  ;;  %v405_v22 = vpop.f32.mrb[0].mxu1 }
 0x16c   : > { %v411_v23 = vmax.f32 %v320_v21, 1e-30  ;;  %v640_v24 = vpop.f32.mrb[1].mxu0  ;;  %v680_v25 = vpop.f32.mrb[1].mxu1  ;;  %v437_v38 = vmax.f32 %v405_v22, 1e-30 }
 0x16d   : > { %v323_v26 = vpop.f32.mrb[2].mxu0  ;;  %v408_v27 = vpop.f32.mrb[2].mxu1 }
 0x16e   : > { %759 = vrsqrt.f32 %v411_v23  ;;  %v641_v28 = vpop.f32.mrb[3].mxu0  ;;  %v681_v29 = vpop.f32.mrb[3].mxu1 }
 0x178   : > { %v760_v30 = vpop.eup %759 }
 0x179   : > { %v413_v31 = vmul.f32 %v760_v30, %v320_v21 }
 0x17b   : > { %v414_v32 = vmin.f32 %v413_v31, 0.9999999 }
 0x17d   : > { %v415_v33 = vadd.f32 1.0, %v414_v32  ;;  %v424_v34 = vsub.f32 0.0, %v414_v32  ;;  %v418_v36 = vmul.f32 -0.5, %v414_v32  ;;  %v421_v42 = vand.u32 2147483647, %v414_v32 }
 0x17f   : > { %761 = vlog2.f32 %v415_v33  ;;  %v425_v35 = vadd.f32 1.0, %v424_v34  ;;  %v428_v37 = vmul.f32 -0.5, %v424_v34  ;;  %v419_v39 = vadd.f32 1.0, %v418_v36 }
 0x180   : > { %v431_v43 = vand.u32 2147483647, %v424_v34  ;;  %vm422_vm1 = vcmp.lt.f32.partialorder %v421_v42, 0.0004427343 }
 0x181   : > { %763 = vlog2.f32 %v425_v35  ;;  %v429_v40 = vadd.f32 1.0, %v428_v37  ;;  %v420_v46 = vmul.f32 %v419_v39, %v414_v32 }
 0x182   : > { %765 = vrsqrt.f32 %v437_v38  ;;  %vm432_vm2 = vcmp.lt.f32.partialorder %v431_v43, 0.0004427343 }
 0x183   : > { %v430_v48 = vmul.f32 %v429_v40, %v424_v34 }
 0x189   : > { %v762_v41 = vpop.eup %761 }
 0x18a   : > { %v417_v44 = vmul.f32 0.6931472, %v762_v41 }
 0x18b   : > { %v764_v45 = vpop.eup %763 }
 0x18c   : > { %v427_v47 = vmul.f32 0.6931472, %v764_v45  ;;  %v423_v49 = vsel %vm422_vm1, %v420_v46, %v417_v44  ;;  %v766_v53 = vpop.eup %765 }
 0x18d   : > { %v440_v56 = vmul.f32 %v766_v53, %v405_v22 }
 0x18e   : > { %v433_v50 = vsel %vm432_vm2, %v430_v48, %v427_v47 }
 0x18f   : > { %v434_v51 = vsub.f32 %v423_v49, %v433_v50 }
 0x191   : > { %v435_v52 = vmul.f32 0.5, %v434_v51 }
 0x193   : > { %v436_v54 = vmul.f32 %v760_v30, %v435_v52 }
 0x195   : > { %v439_v55 = vmul.f32 0.70710677, %v436_v54 }
 0x197   : > { %v441_v57 = vmul.f32 %v440_v56, %v439_v55 }
 0x199   : > { %767 = vtanh.f32 %v441_v57 }
 0x1a3   : > { %v768_v58 = vpop.eup %767 }
 0x1a4   : > { %v443_v59 = vmin.f32 %v768_v58, 0.996 }
 0x1a6   : > { %v444_v60 = vmul.f32 %v766_v53, %v443_v59 }
 0x1a8   : > { %v445_v61 = vmul.f32 1.4142135, %v444_v60 }
 0x1aa   : > { %v446_v62 = vmul.f32 %v445_v61, %v1081_v5 }
 0x1ac   : > { %447 = vst [vmem:[%s173_s17] sm:$0xff] %v446_v62 }
 0x1ad   : > { %840 = shalt.err (!%p837_p7)
}
 0x1ae   : > { %s841_s6 = scalar_lea.hbm %s1122_s29, 128  ;;  %s845_s24 = scalar_lea.hbm %s1168_s2, 256 }
 0x1af   : > { %p842_p9 = scmp.ne.s32.totalorder %s1122_s29, %s841_s6  ;;  %p846_p0 = scmp.lt.u32.totalorder %s1122_s29, %s1168_s2 }
 0x1b0   : > { %p847_p1 = scmp.lt.u32.totalorder %s845_s24, %s841_s6  ;;  %p849_p4 = scmp.lt.u32.totalorder %s841_s6, %s1122_s29 }
 0x1b1   : > { %p843_p2 = pnand %p842_p9, %p1012_p12 }
 0x1b2   : > { %p848_p11 = por %p847_p1, %p846_p0 }
 0x1b3   : > { %p844_p5 = pneg %p843_p2 }
 0x1b4   : > { %p850_p6 = por %p849_p4, %p848_p11 }
 0x1b6   : > { %p851_p8 = pnand %p850_p6, %p844_p5 }
 0x1b8   : > { %854 = shalt.err (!%p851_p8)
}
 0x1b9   : > { %696 = dma.vmem_to_hbm [thread:$0]  (%p1012_p12), %s1124_s22, 128, %s1122_s29, %s449_s30  }
 0x1ba PF: > { %s474_s26 = sand.u32 1, %s885_s9   ;;  %p1183_p10 = scmp.ne.s32.totalorder %s1173_s16, 0 }
 0x1bb   : > { %p1184_p13 = scmp.ge.s32.totalorder %s897_s12, 2  ;;  %s475_s19 = scalar_lea.sflag [#allocation4], %s474_s26 }
 0x1bd   : > { %p707_p3 = pnand %p1184_p13, %p1183_p10 }
 0x1bf   : > { %880 = dma.done.wait (!%p707_p3), %s475_s19, 128  }
 0x1c0   : > { %882 = vsyncadd (!%p707_p3), %s475_s19, 4294967168  ;;  %p16_p7 = scmp.ge.s32.totalorder %s977_s21, 4   ;;  %s1185_s9 = smov %s889_s10 }
 0x1c1   : > { %s1186_s10 = smov %s893_s11  ;;  %s1187_s11 = smov %s1008_s8 }
 0x1c2   : > { %s1188_s12 = smov %s977_s21  ;;  %18 = sbr.rel (!%p16_p7) target bundleno = 6 (0x6), region = 78 }
 0x1c9   :  { %480 = vsyncpa [#allocation3], 1 }
 0x1ca   :  { %482 = vsyncpa [#allocation3 + $0x1], 1 }
 0x1cb   :  { %483 = vsyncpa [#allocation6], 1 }
 0x1cc   :  { %485 = vsyncpa [#allocation6 + $0x1], 1 }
 0x1cd   :  { %486 = vsyncpa [#allocation4], 1 }
 0x1ce   :  { %488 = vsyncpa [#allocation4 + $0x1], 1 }

</bundles_post_ra>
